<compile_context>
chip_gen: v7x
topology: tpu7x:2x2x1
jax: 0.10.0
libtpu: 0.0.40
codegen_flags: <defaults>
</compile_context>

<pallas_src>
import jax
import jax.numpy as jnp
from jax.experimental import pallas as pl
from jax.experimental.pallas import tpu as pltpu

BN_EPS = 1e-5


def critic_kernel(state_ref, w1_ref, gamma_ref, beta_ref,
                  w2_ref, b2_ref, w3_ref, b3_ref, out_ref):
    B = state_ref.shape[0]

    # fc1: (B, S) @ (S, H1).  Bias omitted: it cancels under training-mode BN.
    w1 = w1_ref[...].astype(jnp.float32)
    x = jnp.dot(state_ref[...], w1, preferred_element_type=jnp.float32)

    # BatchNorm1d (training mode, biased variance) - one pass over x:
    # accumulate sum and sum-of-squares, then fold normalize+affine into a
    # single per-feature scale/shift.
    inv_b = jnp.float32(1.0 / B)
    s1 = jnp.sum(x, axis=0, keepdims=True)
    s2 = jnp.sum(x * x, axis=0, keepdims=True)
    mean = s1 * inv_b
    var = jnp.maximum(s2 * inv_b - mean * mean, 0.0)
    scale = gamma_ref[...] * jax.lax.rsqrt(var + BN_EPS)
    shift = beta_ref[...] - mean * scale
    xc = jnp.maximum(x * scale + shift, 0.0)               # BN + ReLU, one pass

    # fc2 + ReLU: (B, H1) @ (H1, H2) + (1, H2)
    w2 = w2_ref[...].astype(jnp.float32)
    h2 = jnp.dot(xc, w2, preferred_element_type=jnp.float32) + b2_ref[...]
    h2 = jnp.maximum(h2, 0.0)

    # fc3: N=1 output column -> VPU multiply + lane (XLU) reduce instead of
    # a 1-of-256-columns MXU matmul.  w3 is stored lane-dense as (1, H2).
    w3 = w3_ref[...].astype(jnp.float32)
    out_ref[...] = jnp.sum(h2 * w3, axis=-1, keepdims=True) + b3_ref[...]


def critic_forward(state, params):
    B = state.shape[0]
    args = (state,
            params["w1"],
            params["gamma"], params["beta"],
            params["w2"], params["b2"],
            params["w3"], params["b3"])
    # Small problem: single kernel invocation, every operand one full
    # VMEM-resident block (full-array blocks are exempt from the (8,128) rule).
    # TODO(synk): for repeated per-step RL evaluation, keep the ~0.25 MB of
    # bf16 weights VMEM-resident across calls via a cross-call prefetch.
    return pl.pallas_call(
        critic_kernel,
        out_shape=jax.ShapeDtypeStruct((B, 1), jnp.float32),
        in_specs=[pl.BlockSpec(memory_space=pltpu.MemorySpace.VMEM)] * len(args),
        out_specs=pl.BlockSpec(memory_space=pltpu.MemorySpace.VMEM),
    )(*args)


def init_params(key, state_size, fcs1_units=400, fc2_units=300):
    """Deterministic parameter init mirroring Critic.__init__ shapes.

    hidden_init in the reference uses weight.size()[0] (= out_features) as
    fan_in; we reproduce the same limits for determinism's sake.
    Weights are stored in bf16 (HBM/DMA savings); biases / BN params in f32.
    """
    k1, k2, k3, k1b, k2b, k3b = jax.random.split(key, 6)
    lim1 = 1.0 / jnp.sqrt(jnp.float32(fcs1_units))
    lim2 = 1.0 / jnp.sqrt(jnp.float32(fc2_units))
    lim3 = 0.003
    params = {
        # weights stored (in, out); bf16 storage dtype
        "w1": jax.random.uniform(k1, (state_size, fcs1_units), jnp.float32,
                                 -lim1, lim1).astype(jnp.bfloat16),
        "b1": jax.random.uniform(k1b, (1, fcs1_units), jnp.float32, -lim1, lim1),
        "w2": jax.random.uniform(k2, (fcs1_units, fc2_units), jnp.float32,
                                 -lim2, lim2).astype(jnp.bfloat16),
        "b2": jax.random.uniform(k2b, (1, fc2_units), jnp.float32, -lim2, lim2),
        # w3 stored lane-dense as (1, fc2_units)
        "w3": jax.random.uniform(k3, (1, fc2_units), jnp.float32,
                                 -lim3, lim3).astype(jnp.bfloat16),
        "b3": jax.random.uniform(k3b, (1, 1), jnp.float32, -lim3, lim3),
        # BatchNorm1d affine params (PyTorch defaults: gamma=1, beta=0)
        "gamma": jnp.ones((1, fcs1_units), jnp.float32),
        "beta": jnp.zeros((1, fcs1_units), jnp.float32),
    }
    return params


def _reference(state, p):
    """Pure-JAX reference, structured exactly like the PyTorch forward
    (including the fc1 bias, which the kernel drops because it cancels)."""
    w1 = p["w1"].astype(jnp.float32)
    w2 = p["w2"].astype(jnp.float32)
    w3 = p["w3"].astype(jnp.float32).reshape(-1, 1)       # (H2, 1)
    x = state @ w1 + p["b1"]
    mean = jnp.mean(x, axis=0, keepdims=True)
    var = jnp.mean((x - mean) ** 2, axis=0, keepdims=True)
    xn = (x - mean) / jnp.sqrt(var + BN_EPS) * p["gamma"] + p["beta"]
    xc = jnp.maximum(xn, 0.0)
    h2 = jnp.maximum(xc @ w2 + p["b2"], 0.0)
    return h2 @ w3 + p["b3"]


if __name__ == "__main__":
    key = jax.random.PRNGKey(0)
    k_state, k_params = jax.random.split(key)

    B, STATE_SIZE = 8, 16          # small batch / state dim for the demo
    FCS1, FC2 = 400, 300           # module defaults

    params = init_params(k_params, STATE_SIZE, FCS1, FC2)
    state = jax.random.normal(k_state, (B, STATE_SIZE), jnp.float32)

    out = critic_forward(state, params)
    out = jax.block_until_ready(out)

    ref = _reference(state, params)
    assert out.shape == (B, 1)
    assert jnp.allclose(out, ref, atol=1e-4, rtol=1e-4), (
        f"max abs err = {jnp.max(jnp.abs(out - ref))}")

    print("KERNEL_OK")
</pallas_src>

<mosaic_0001>
module attributes {stable_mosaic.version = 11 : i64} {
  func.func @critic_kernel(%arg0: memref<8x16xf32, #tpu.memory_space<vmem>>, %arg1: memref<16x400xbf16, #tpu.memory_space<vmem>>, %arg2: memref<1x400xf32, #tpu.memory_space<vmem>>, %arg3: memref<1x400xf32, #tpu.memory_space<vmem>>, %arg4: memref<400x300xbf16, #tpu.memory_space<vmem>>, %arg5: memref<1x300xf32, #tpu.memory_space<vmem>>, %arg6: memref<1x300xbf16, #tpu.memory_space<vmem>>, %arg7: memref<1x1xf32, #tpu.memory_space<vmem>>, %arg8: memref<8x1xf32, #tpu.memory_space<vmem>>) attributes {dimension_semantics = [], scalar_prefetch = 0 : i64, scratch_operands = 0 : i64, tpu.core_type = #tpu.core_type<tc>} {
    %c0 = arith.constant 0 : index
    %c0_0 = arith.constant 0 : index
    %0 = vector.load %arg1[%c0, %c0_0] : memref<16x400xbf16, #tpu.memory_space<vmem>>, vector<16x400xbf16>
    %1 = arith.extf %0 : vector<16x400xbf16> to vector<16x400xf32>
    %c0_1 = arith.constant 0 : index
    %c0_2 = arith.constant 0 : index
    %2 = vector.load %arg0[%c0_1, %c0_2] : memref<8x16xf32, #tpu.memory_space<vmem>>, vector<8x16xf32>
    %cst = arith.constant dense<0.000000e+00> : vector<8x400xf32>
    %3 = tpu.matmul %2, %1, %cst {dimension_numbers = #tpu.dot_dimension_numbers<[1], [0], [0], [1], [0, 0, 1, 1], [], []>} : vector<8x16xf32>, vector<16x400xf32>, vector<8x400xf32> -> vector<8x400xf32>
    %cst_3 = arith.constant dense<0.000000e+00> : vector<400xf32>
    %4 = vector.multi_reduction <add>, %3, %cst_3 [0] : vector<8x400xf32> to vector<400xf32>
    %5 = vector.shape_cast %4 : vector<400xf32> to vector<1x400xf32>
    %6 = arith.mulf %3, %3 : vector<8x400xf32>
    %cst_4 = arith.constant dense<0.000000e+00> : vector<400xf32>
    %7 = vector.multi_reduction <add>, %6, %cst_4 [0] : vector<8x400xf32> to vector<400xf32>
    %8 = vector.shape_cast %7 : vector<400xf32> to vector<1x400xf32>
    %cst_5 = arith.constant 1.250000e-01 : f32
    %9 = vector.broadcast %cst_5 : f32 to vector<1x400xf32>
    %10 = arith.mulf %5, %9 : vector<1x400xf32>
    %cst_6 = arith.constant 1.250000e-01 : f32
    %11 = vector.broadcast %cst_6 : f32 to vector<1x400xf32>
    %12 = arith.mulf %8, %11 : vector<1x400xf32>
    %13 = arith.mulf %10, %10 : vector<1x400xf32>
    %14 = arith.subf %12, %13 : vector<1x400xf32>
    %cst_7 = arith.constant 0.000000e+00 : f32
    %15 = vector.broadcast %cst_7 : f32 to vector<1x400xf32>
    %16 = arith.maximumf %14, %15 : vector<1x400xf32>
    %c0_8 = arith.constant 0 : index
    %c0_9 = arith.constant 0 : index
    %17 = vector.load %arg2[%c0_8, %c0_9] : memref<1x400xf32, #tpu.memory_space<vmem>>, vector<1x400xf32>
    %cst_10 = arith.constant 9.99999974E-6 : f32
    %18 = vector.broadcast %cst_10 : f32 to vector<1x400xf32>
    %19 = arith.addf %16, %18 : vector<1x400xf32>
    %20 = math.rsqrt %19 : vector<1x400xf32>
    %21 = arith.mulf %17, %20 : vector<1x400xf32>
    %c0_11 = arith.constant 0 : index
    %c0_12 = arith.constant 0 : index
    %22 = vector.load %arg3[%c0_11, %c0_12] : memref<1x400xf32, #tpu.memory_space<vmem>>, vector<1x400xf32>
    %23 = arith.mulf %10, %21 : vector<1x400xf32>
    %24 = arith.subf %22, %23 : vector<1x400xf32>
    %25 = vector.broadcast %21 : vector<1x400xf32> to vector<8x400xf32>
    %26 = arith.mulf %3, %25 : vector<8x400xf32>
    %27 = vector.broadcast %24 : vector<1x400xf32> to vector<8x400xf32>
    %28 = arith.addf %26, %27 : vector<8x400xf32>
    %cst_13 = arith.constant 0.000000e+00 : f32
    %29 = vector.broadcast %cst_13 : f32 to vector<8x400xf32>
    %30 = arith.maximumf %28, %29 : vector<8x400xf32>
    %c0_14 = arith.constant 0 : index
    %c0_15 = arith.constant 0 : index
    %31 = vector.load %arg4[%c0_14, %c0_15] : memref<400x300xbf16, #tpu.memory_space<vmem>>, vector<400x300xbf16>
    %32 = arith.extf %31 : vector<400x300xbf16> to vector<400x300xf32>
    %cst_16 = arith.constant dense<0.000000e+00> : vector<8x300xf32>
    %33 = tpu.matmul %30, %32, %cst_16 {dimension_numbers = #tpu.dot_dimension_numbers<[1], [0], [0], [1], [0, 0, 1, 1], [], []>} : vector<8x400xf32>, vector<400x300xf32>, vector<8x300xf32> -> vector<8x300xf32>
    %c0_17 = arith.constant 0 : index
    %c0_18 = arith.constant 0 : index
    %34 = vector.load %arg5[%c0_17, %c0_18] : memref<1x300xf32, #tpu.memory_space<vmem>>, vector<1x300xf32>
    %35 = vector.broadcast %34 : vector<1x300xf32> to vector<8x300xf32>
    %36 = arith.addf %33, %35 : vector<8x300xf32>
    %cst_19 = arith.constant 0.000000e+00 : f32
    %37 = vector.broadcast %cst_19 : f32 to vector<8x300xf32>
    %38 = arith.maximumf %36, %37 : vector<8x300xf32>
    %c0_20 = arith.constant 0 : index
    %c0_21 = arith.constant 0 : index
    %39 = vector.load %arg6[%c0_20, %c0_21] : memref<1x300xbf16, #tpu.memory_space<vmem>>, vector<1x300xbf16>
    %40 = arith.extf %39 : vector<1x300xbf16> to vector<1x300xf32>
    %41 = vector.broadcast %40 : vector<1x300xf32> to vector<8x300xf32>
    %42 = arith.mulf %38, %41 : vector<8x300xf32>
    %cst_22 = arith.constant dense<0.000000e+00> : vector<8xf32>
    %43 = vector.multi_reduction <add>, %42, %cst_22 [1] : vector<8x300xf32> to vector<8xf32>
    %44 = vector.shape_cast %43 : vector<8xf32> to vector<8x1xf32>
    %c0_23 = arith.constant 0 : index
    %c0_24 = arith.constant 0 : index
    %45 = vector.load %arg7[%c0_23, %c0_24] : memref<1x1xf32, #tpu.memory_space<vmem>>, vector<1x1xf32>
    %46 = vector.broadcast %45 : vector<1x1xf32> to vector<8x1xf32>
    %47 = arith.addf %44, %46 : vector<8x1xf32>
    %c0_25 = arith.constant 0 : index
    %c0_26 = arith.constant 0 : index
    %48 = vector.load %arg8[%c0_25, %c0_26] : memref<8x1xf32, #tpu.memory_space<vmem>>, vector<8x1xf32>
    tpu.vector_store %arg8[%c0_25, %c0_26], %47 {strides = array<i32>} : memref<8x1xf32, #tpu.memory_space<vmem>>, vector<8x1xf32>,
    return
  }
}

</mosaic_0001>

<bundles_post_ra>
// kernel: tpu_custom_call.1
= control target key start
LH: loop header
LB: loop body
LE: loop exit
PB: predicated region body
PF: predicated region fallthrough
CT: control target
= control target key end

     0   :  { %s1717_s0 = inlined_call_operand.hbm [shape: f32[8,16], index: 0, kind: input, shape index: {}]   ;;  %s1718_s1 = inlined_call_operand.hbm [shape: bf16[16,400], index: 1, kind: input, shape index: {}]   ;;  %s1719_s2 = inlined_call_operand.vmem [shape: f32[1,400], index: 2, kind: input, shape index: {}]   ;;  %s1720_s3 = inlined_call_operand.vmem [shape: f32[1,400], index: 3, kind: input, shape index: {}]   ;;  %s1721_s4 = inlined_call_operand.hbm [shape: bf16[400,300], index: 4, kind: input, shape index: {}]   ;;  %s1722_s5 = inlined_call_operand.vmem [shape: f32[1,300], index: 5, kind: input, shape index: {}]   ;;  %s1723_s6 = inlined_call_operand.vmem [shape: bf16[1,300], index: 6, kind: input, shape index: {}]   ;;  %s1724_s7 = inlined_call_operand.<no memory space> [shape: f32[1,1], index: 7, kind: input, shape index: {}]   ;;  %s1725_s8 = inlined_call_operand.vmem [shape: f32[8,1], index: 8, kind: output, shape index: {}]  }
   0x1   :  { %v13_v0 = vstv %s1724_s7 }
   0x2   :  { %14 = vst [vmem:[#allocation2] sm:$0x1] %v13_v0 }
   0x3   :  { %15 = vsyncpa [#allocation4], 0 }
   0x4   :  { %16 = vsyncpa [#allocation6], 0  ;;  %s1525_s29 = smov [#allocation5]   ;;  %s1455_s11 = scalar_lea.hbm %s1718_s1, 512 }
   0x5   :  { %s32_s30 = sshll.u32 %s1525_s29, 4  ;;  %p1456_p0 = scmp.ne.s32.totalorder %s1718_s1, %s1455_s11  ;;  %s33_s30 = int_to_ptr.vmem [resolvable:$true] %s32_s30 }
   0x6   :  { %p1459_p1 = scmp.lt.u32.totalorder %s1455_s11, %s1718_s1 }
   0x8   :  { %p1461_p2 = pnand %p1459_p1, %p1456_p0 }
   0xa   :  { %1464 = shalt.err (!%p1461_p2)
}
   0xb   :  { %s1465_s7 = scalar_lea.vmem %s33_s30, 512  ;;  %p1470_p4 = scmp.lt.s32.totalorder %s33_s30, %s33_s30 }
   0xc   :  { %p1466_p3 = scmp.ne.s32.totalorder %s33_s30, %s1465_s7  ;;  %p1471_p5 = scmp.lt.s32.totalorder %s1465_s7, %s1465_s7 }
   0xe   :  { %p1472_p6 = por %p1471_p5, %p1470_p4 }
  0x10   :  { %p1473_p7 = pnand %p1472_p6, %p1466_p3 }
  0x12   :  { %1476 = shalt.err (!%p1473_p7)
}
  0x13   :  { %s1526_s16 = smov 256   ;;  %s1527_s17 = smov 16  }
  0x14   :  { %38 = dma.hbm_to_vmem [thread:$0]  %s1718_s1, 512, %s33_s30, [#allocation6], %s1526_s16, %s1526_s16, %s1527_s17  }
  0x15   :  { %s1528_s20 = smov [#allocation3]   ;;  %s1529_s22 = smov [#allocation7]  }
  0x16   :  { %s23_s21 = sshll.u32 %s1528_s20, 4  ;;  %s48_s23 = sshll.u32 %s1529_s22, 4  ;;  %s24_s21 = int_to_ptr.vmem [resolvable:$true] %s23_s21  ;;  %s49_s23 = int_to_ptr.vmem [resolvable:$true] %s48_s23 }
  0x17   :  { %s1477_s26 = scalar_lea.hbm %s1717_s0, 128 }
  0x18   :  { %p1478_p8 = scmp.ne.s32.totalorder %s1717_s0, %s1477_s26  ;;  %p1481_p9 = scmp.lt.u32.totalorder %s1477_s26, %s1717_s0 }
  0x1a   :  { %p1483_p10 = pnand %p1481_p9, %p1478_p8 }
  0x1c   :  { %1486 = shalt.err (!%p1483_p10)
}
  0x1d   :  { %s1487_s1 = scalar_lea.vmem %s24_s21, 128  ;;  %p1492_p12 = scmp.lt.s32.totalorder %s24_s21, %s24_s21 }
  0x1e   :  { %p1488_p11 = scmp.ne.s32.totalorder %s24_s21, %s1487_s1  ;;  %p1493_p13 = scmp.lt.s32.totalorder %s1487_s1, %s1487_s1 }
  0x20   :  { %p1494_p0 = por %p1493_p13, %p1492_p12 }
  0x22   :  { %p1495_p1 = pnand %p1494_p0, %p1488_p11 }
  0x24   :  { %1498 = shalt.err (!%p1495_p1)
}
  0x25   :  { %26 = dma.hbm_to_vmem [thread:$0]  %s1717_s0, 128, %s24_s21, [#allocation4]  }
  0x26   :  { %s1499_s13 = scalar_lea.hbm %s1721_s4, 9600 }
  0x27   :  { %p1500_p2 = scmp.ne.s32.totalorder %s1721_s4, %s1499_s13  ;;  %p1503_p3 = scmp.lt.u32.totalorder %s1499_s13, %s1721_s4 }
  0x29   :  { %p1505_p4 = pnand %p1503_p3, %p1500_p2 }
  0x2b   :  { %1508 = shalt.err (!%p1505_p4)
}
  0x2c   :  { %s1509_s17 = scalar_lea.vmem %s49_s23, 9600  ;;  %p1514_p6 = scmp.lt.s32.totalorder %s49_s23, %s49_s23 }
  0x2d   :  { %p1510_p5 = scmp.ne.s32.totalorder %s49_s23, %s1509_s17  ;;  %p1515_p7 = scmp.lt.s32.totalorder %s1509_s17, %s1509_s17 }
  0x2f   :  { %p1516_p8 = por %p1515_p7, %p1514_p6 }
  0x31   :  { %p1517_p9 = pnand %p1516_p8, %p1510_p5 }
  0x33   :  { %1520 = shalt.err (!%p1517_p9)
}
  0x34   :  { %s1530_s0 = smov 192   ;;  %s1531_s18 = smov 12  }
  0x35   :  { %54 = dma.hbm_to_vmem [thread:$0]  %s1721_s4, 9600, %s49_s23, [#allocation6], %s1530_s0, %s1530_s0, %s1531_s18  }
  0x36   :  { %1521 = dma.done.wait [#allocation4], 128  }
  0x37   :  { %1522 = vsyncadd [#allocation4], 4294967168 }
  0x38   :  { %1523 = dma.done.wait [#allocation6], 10112  }
  0x39   :  { %1524 = vsyncadd [#allocation6], 4294957184  ;;  %v1532_v1 = vmov 0.0   ;;  %v1341_v2 = vld [vmem:[#allocation5 + $0x4] ss:$16 sps:$4 sm:$0xff]   ;;  %v82_v4 = vld [vmem:[#allocation3] sm:$0xff] }
  0x3a   :  { %151 = vmatprep.mubr.f32.mxu1 %v1532_v1  ;;  %v1343_v3 = vld [vmem:[#allocation5] ss:$16 sps:$4 sm:$0xff]   ;;  %1082 = vmatprep.subr.bf16.mxu1 %v1341_v2  ;;  %v1344_v5 = vld [vmem:[#allocation5 + $0xc] ss:$16 sps:$4 sm:$0xff]   ;;  %v1346_v6 = vld [vmem:[#allocation5 + $0x8] ss:$16 sps:$4 sm:$0xff]  }
  0x3b   :  { %1084 = vmatpush1.bf16.msra.mxu1 %v1343_v3  ;;  %vm83_vm0 = vcmask 130048   ;;  %v1347_v7 = vld [vmem:[#allocation7 + $0x4] ss:$12 sps:$4 sm:$0xff]   ;;  %v1349_v8 = vld [vmem:[#allocation7] ss:$12 sps:$4 sm:$0xff]   ;;  %v1533_v56 = vmov 0.0|0.0  }
  0x3c   :  { %1086 = vmatprep.subr.bf16.mxu1 %v1344_v5  ;;  %1090 = vmatprep.subr.bf16.mxu0 %v1347_v7  ;;  %v1350_v9 = vld [vmem:[#allocation7 + $0x1c] ss:$12 sps:$4 sm:$0xff]   ;;  %v1352_v10 = vld [vmem:[#allocation7 + $0x18] ss:$12 sps:$4 sm:$0xff]   ;;  %v1353_v11 = vld [vmem:[#allocation7 + $0x34] ss:$12 sps:$4 sm:$0xff]  }
  0x3d   :  { %1092 = vmatpush1.bf16.msra.mxu0 %v1349_v8  ;;  %v1355_v12 = vld [vmem:[#allocation7 + $0x30] ss:$12 sps:$4 sm:$0xff]   ;;  %v1356_v13 = vld [vmem:[#allocation7 + $0x4c] ss:$12 sps:$4 sm:$0xff]   ;;  %v1358_v14 = vld [vmem:[#allocation7 + $0x48] ss:$12 sps:$4 sm:$0xff]  }
  0x3e   :  { %1041 = vmatmul.mubr.msk.f32.vlgmr.msra.gmra.mrb[0].mxu1 %vm83_vm0, %v82_v4  ;;  %1094 = vmatprep.subr.bf16.mxu0 %v1350_v9  ;;  %v1359_v15 = vld [vmem:[#allocation7 + $0x64] ss:$12 sps:$4 sm:$0xff]   ;;  %v1361_v16 = vld [vmem:[#allocation7 + $0x60] ss:$12 sps:$4 sm:$0xff]   ;;  %v1362_v17 = vld [vmem:[#allocation7 + $0x7c] ss:$12 sps:$4 sm:$0xff]  }
  0x3f   :  { %1088 = vmatpush1.bf16.msra.mxu1 %v1346_v6  ;;  %222 = vmatprep.mubr.f32.mxu1 %v1532_v1  ;;  %v1364_v18 = vld [vmem:[#allocation7 + $0x78] ss:$12 sps:$4 sm:$0xff]   ;;  %v1365_v19 = vld [vmem:[#allocation7 + $0x94] ss:$12 sps:$4 sm:$0xff]   ;;  %v1367_v20 = vld [vmem:[#allocation7 + $0x90] ss:$12 sps:$4 sm:$0xff]  }
  0x40   :  { %v1368_v21 = vld [vmem:[#allocation7 + $0xac] ss:$12 sps:$4 sm:$0xff]   ;;  %v1370_v22 = vld [vmem:[#allocation7 + $0xa8] ss:$12 sps:$4 sm:$0xff]   ;;  %v1371_v23 = vld [vmem:[#allocation7 + $0xc4] ss:$12 sps:$4 sm:$0xff]  }
  0x41   :  { %1096 = vmatpush1.bf16.msra.mxu0 %v1352_v10  ;;  %v1373_v24 = vld [vmem:[#allocation7 + $0xc8] ss:$12 sps:$4 sm:$0xff]   ;;  %v1374_v25 = vld [vmem:[#allocation7 + $0xc0] ss:$12 sps:$4 sm:$0xff]   ;;  %v1379_v29 = vld [vmem:[#allocation7 + $0xd8] ss:$12 sps:$4 sm:$0xff]  }
  0x42   :  { %1042 = vmatmul.mubr.msk.f32.vlgmr.msra.gmra.mrb[2].mxu1 %vm83_vm0, %v82_v4  ;;  %1098 = vmatprep.subr.bf16.mxu0 %v1353_v11  ;;  %v1375_v26 = vld [vmem:[#allocation7 + $0x8] ss:$12 sps:$4 sm:$0xff]   ;;  %v1378_v28 = vld [vmem:[#allocation7 + $0xe0] ss:$12 sps:$4 sm:$0xff]   ;;  %v1383_v32 = vld [vmem:[#allocation7 + $0xf8] ss:$12 sps:$4 sm:$0xff]  }
  0x43   :  { %1190 = vmatprep.subr.bf16.mxu1 %v1373_v24  ;;  %v1376_v27 = vld [vmem:[#allocation7 + $0xdc] ss:$12 sps:$4 sm:$0xff]   ;;  %v1380_v30 = vld [vmem:[#allocation7 + $0x20] ss:$12 sps:$4 sm:$0xff]   ;;  %v1385_v34 = vld [vmem:[#allocation7 + $0x38] ss:$12 sps:$4 sm:$0xff]  }
  0x44   :  { %1192 = vmatpush3.bf16.msra.mxu1 %v1375_v26  ;;  %v1381_v31 = vld [vmem:[#allocation7 + $0xf4] ss:$12 sps:$4 sm:$0xff]   ;;  %v1384_v33 = vld [vmem:[#allocation7 + $0xf0] ss:$12 sps:$4 sm:$0xff]   ;;  %v1386_v35 = vld [vmem:[#allocation7 + $0x10c] ss:$12 sps:$4 sm:$0xff]  }
  0x45   :  { %1100 = vmatpush1.bf16.msra.mxu0 %v1355_v12  ;;  %1194 = vmatprep.subr.bf16.mxu1 %v1378_v28  ;;  %v1388_v36 = vld [vmem:[#allocation7 + $0x110] ss:$12 sps:$4 sm:$0xff]   ;;  %v1389_v37 = vld [vmem:[#allocation7 + $0x108] ss:$12 sps:$4 sm:$0xff]   ;;  %v1394_v41 = vld [vmem:[#allocation7 + $0x120] ss:$12 sps:$4 sm:$0xff]  }
  0x46   :  { %1102 = vmatprep.subr.bf16.mxu0 %v1356_v13  ;;  %v1390_v38 = vld [vmem:[#allocation7 + $0x50] ss:$12 sps:$4 sm:$0xff]   ;;  %v1393_v40 = vld [vmem:[#allocation7 + $0x128] ss:$12 sps:$4 sm:$0xff]   ;;  %v1398_v44 = vld [vmem:[#allocation7 + $0x140] ss:$12 sps:$4 sm:$0xff]  }
  0x47   :  { %v1391_v39 = vld [vmem:[#allocation7 + $0x124] ss:$12 sps:$4 sm:$0xff]   ;;  %v1395_v42 = vld [vmem:[#allocation7 + $0x68] ss:$12 sps:$4 sm:$0xff]   ;;  %v1400_v46 = vld [vmem:[#allocation7 + $0x80] ss:$12 sps:$4 sm:$0xff]  }
  0x48   :  { %1196 = vmatpush3.bf16.msra.mxu1 %v1380_v30  ;;  %v1396_v43 = vld [vmem:[#allocation7 + $0x13c] ss:$12 sps:$4 sm:$0xff]   ;;  %v1399_v45 = vld [vmem:[#allocation7 + $0x138] ss:$12 sps:$4 sm:$0xff]   ;;  %v1401_v47 = vld [vmem:[#allocation7 + $0x154] ss:$12 sps:$4 sm:$0xff]  }
  0x49   :  { %1104 = vmatpush1.bf16.msra.mxu0 %v1358_v14  ;;  %1198 = vmatprep.subr.bf16.mxu1 %v1383_v32  ;;  %v1403_v48 = vld [vmem:[#allocation7 + $0x158] ss:$12 sps:$4 sm:$0xff]   ;;  %v1404_v49 = vld [vmem:[#allocation7 + $0x150] ss:$12 sps:$4 sm:$0xff]   ;;  %v1409_v53 = vld [vmem:[#allocation7 + $0x168] ss:$12 sps:$4 sm:$0xff]  }
  0x4a   :  { %1106 = vmatprep.subr.bf16.mxu0 %v1359_v15  ;;  %v1405_v50 = vld [vmem:[#allocation7 + $0x98] ss:$12 sps:$4 sm:$0xff]   ;;  %v1408_v52 = vld [vmem:[#allocation7 + $0x170] ss:$12 sps:$4 sm:$0xff]   ;;  %vm1020_vm1 = vcmask 359424   ;;  %vm1033_vm2 = vcmask 7168  }
  0x4b   :  { %v1406_v51 = vld [vmem:[#allocation7 + $0x16c] ss:$12 sps:$4 sm:$0xff]   ;;  %v1410_v54 = vld [vmem:[#allocation7 + $0xb0] ss:$12 sps:$4 sm:$0xff]  }
  0x4c   :  { %1200 = vmatpush3.bf16.msra.mxu1 %v1385_v34  ;;  %v1411_v55 = vld [vmem:[#allocation7 + $0x184] ss:$12 sps:$4 sm:$0xff]  }
  0x4d   :  { %1108 = vmatpush1.bf16.msra.mxu0 %v1361_v16  ;;  %1202 = vmatprep.subr.bf16.mxu1 %v1388_v36 }
  0x4e   :  { %1110 = vmatprep.subr.bf16.mxu0 %v1362_v17 }
  0x50   :  { %1204 = vmatpush3.bf16.msra.mxu1 %v1390_v38 }
  0x51   :  { %1112 = vmatpush1.bf16.msra.mxu0 %v1364_v18  ;;  %1206 = vmatprep.subr.bf16.mxu1 %v1393_v40 }
  0x52   :  { %1114 = vmatprep.subr.bf16.mxu0 %v1365_v19 }
  0x54   :  { %1208 = vmatpush3.bf16.msra.mxu1 %v1395_v42 }
  0x55   :  { %1116 = vmatpush1.bf16.msra.mxu0 %v1367_v20  ;;  %1210 = vmatprep.subr.bf16.mxu1 %v1398_v44 }
  0x56   :  { %1118 = vmatprep.subr.bf16.mxu0 %v1368_v21 }
  0x58   :  { %1212 = vmatpush3.bf16.msra.mxu1 %v1400_v46 }
  0x59   :  { %1120 = vmatpush1.bf16.msra.mxu0 %v1370_v22  ;;  %1214 = vmatprep.subr.bf16.mxu1 %v1403_v48 }
  0x5a   :  { %1122 = vmatprep.subr.bf16.mxu0 %v1371_v23 }
  0x5c   :  { %1216 = vmatpush3.bf16.msra.mxu1 %v1405_v50 }
  0x5d   :  { %1124 = vmatpush1.bf16.msra.mxu0 %v1374_v25  ;;  %1218 = vmatprep.subr.bf16.mxu1 %v1408_v52 }
  0x5e   :  { %1126 = vmatprep.subr.bf16.mxu0 %v1376_v27 }
  0x60   :  { %1220 = vmatpush3.bf16.msra.mxu1 %v1410_v54 }
  0x61   :  { %1128 = vmatpush1.bf16.msra.mxu0 %v1379_v29  ;;  %1221 = vmatprep.subr.bf16.mxu1 %v1533_v56 }
  0x62   :  { %1130 = vmatprep.subr.bf16.mxu0 %v1381_v31 }
  0x65   :  { %1132 = vmatpush1.bf16.msra.mxu0 %v1384_v33 }
  0x66   :  { %1134 = vmatprep.subr.bf16.mxu0 %v1386_v35 }
  0x69   :  { %1136 = vmatpush1.bf16.msra.mxu0 %v1389_v37 }
  0x6a   :  { %1138 = vmatprep.subr.bf16.mxu0 %v1391_v39 }
  0x6d   :  { %1140 = vmatpush1.bf16.msra.mxu0 %v1394_v41 }
  0x6e   :  { %1142 = vmatprep.subr.bf16.mxu0 %v1396_v43 }
  0x71   :  { %1144 = vmatpush1.bf16.msra.mxu0 %v1399_v45 }
  0x72   :  { %1146 = vmatprep.subr.bf16.mxu0 %v1401_v47 }
  0x75   :  { %1148 = vmatpush1.bf16.msra.mxu0 %v1404_v49 }
  0x76   :  { %1150 = vmatprep.subr.bf16.mxu0 %v1406_v51 }
  0x79   :  { %1152 = vmatpush1.bf16.msra.mxu0 %v1409_v53 }
  0x7a   :  { %1154 = vmatprep.subr.bf16.mxu0 %v1411_v55 }
 0x111   :  { %v1622_v57 = vpop.f32.mrb[0].mxu1 }
 0x112   :  { %v229_v58 = vrot.slane %v1622_v57, 4  ;;  %v254_v59 = vmul.f32 %v1622_v57, %v1622_v57  ;;  %v1627_v60 = vpop.f32.mrb[1].mxu1 }
 0x113   :  { %v235_v61 = vrot.slane %v1627_v60, 4  ;;  %v255_v62 = vmul.f32 %v1627_v60, %v1627_v60 }
 0x114   :  { %v230_v63 = vadd.f32 %v229_v58, %v1622_v57  ;;  %v258_v0 = vrot.slane %v254_v59, 4 }
 0x115   :  { %v236_v1 = vadd.f32 %v235_v61, %v1627_v60  ;;  %v264_v2 = vrot.slane %v255_v62, 4  ;;  %v1634_v3 = vpop.f32.mrb[2].mxu1 }
 0x116   :  { %v231_v4 = vrot.slane %v230_v63, 2  ;;  %v259_v5 = vadd.f32 %v258_v0, %v254_v59  ;;  %v241_v6 = vrot.slane %v1634_v3, 4  ;;  %v256_v7 = vmul.f32 %v1634_v3, %v1634_v3  ;;  %v1639_v8 = vpop.f32.mrb[3].mxu1 }
 0x117   :  { %v237_v9 = vrot.slane %v236_v1, 2  ;;  %v265_v10 = vadd.f32 %v264_v2, %v255_v62  ;;  %v247_v11 = vsel %vm83_vm0, %v1639_v8, 0.0  ;;  %v257_v12 = vmul.f32 %v1639_v8, %v1639_v8 }
 0x118   :  { %v232_v13 = vadd.f32 %v231_v4, %v230_v63  ;;  %v260_v14 = vrot.slane %v259_v5, 2  ;;  %v242_v15 = vadd.f32 %v241_v6, %v1634_v3  ;;  %v270_v16 = vrot.slane %v256_v7, 4 }
 0x119   :  { %v238_v17 = vadd.f32 %v237_v9, %v236_v1  ;;  %v266_v18 = vrot.slane %v265_v10, 2  ;;  %v248_v19 = vrot.slane %v247_v11, 4  ;;  %v276_v20 = vsel %vm83_vm0, %v257_v12, 0.0 }
 0x11a   :  { %v233_v21 = vrot.slane %v232_v13, 1  ;;  %v261_v22 = vadd.f32 %v260_v14, %v259_v5  ;;  %v243_v23 = vrot.slane %v242_v15, 2  ;;  %v271_v24 = vadd.f32 %v270_v16, %v256_v7 }
 0x11b   :  { %v239_v25 = vrot.slane %v238_v17, 1  ;;  %v267_v26 = vadd.f32 %v266_v18, %v265_v10  ;;  %v249_v27 = vadd.f32 %v248_v19, %v247_v11  ;;  %v277_v28 = vrot.slane %v276_v20, 4 }
 0x11c   :  { %v234_v29 = vadd.f32 %v233_v21, %v232_v13  ;;  %v262_v30 = vrot.slane %v261_v22, 1  ;;  %v244_v31 = vadd.f32 %v243_v23, %v242_v15  ;;  %v272_v32 = vrot.slane %v271_v24, 2 }
 0x11d   :  { %v240_v33 = vadd.f32 %v239_v25, %v238_v17  ;;  %v268_v34 = vrot.slane %v267_v26, 1  ;;  %v250_v35 = vrot.slane %v249_v27, 2  ;;  %v278_v36 = vadd.f32 %v277_v28, %v276_v20 }
 0x11e   :  { %v263_v37 = vadd.f32 %v262_v30, %v261_v22  ;;  %v1647_v38 = vmul.f32 0.125, %v234_v29  ;;  %v245_v39 = vrot.slane %v244_v31, 1  ;;  %v273_v40 = vadd.f32 %v272_v32, %v271_v24 }
 0x11f   :  { %v269_v41 = vadd.f32 %v268_v34, %v267_v26  ;;  %v1649_v42 = vmul.f32 0.125, %v240_v33  ;;  %v251_v43 = vadd.f32 %v250_v35, %v249_v27  ;;  %v279_v44 = vrot.slane %v278_v36, 2 }
 0x120   :  { %v287_v45 = vmul.f32 0.125, %v263_v37  ;;  %v291_v46 = vmul.f32 %v1647_v38, %v1647_v38  ;;  %v246_v47 = vadd.f32 %v245_v39, %v244_v31  ;;  %v274_v48 = vrot.slane %v273_v40, 1  ;;  %v303_v31 = vld [vmem:[%s1719_s2] sm:$0xf] }
 0x121   :  { %v288_v49 = vmul.f32 0.125, %v269_v41  ;;  %v292_v50 = vmul.f32 %v1649_v42, %v1649_v42  ;;  %v252_v51 = vrot.slane %v251_v43, 1  ;;  %v280_v52 = vadd.f32 %v279_v44, %v278_v36 }
 0x122   :  { %v295_v53 = vsub.f32 %v287_v45, %v291_v46  ;;  %v275_v54 = vadd.f32 %v274_v48, %v273_v40  ;;  %v285_v55 = vmul.f32 0.125, %v246_v47  ;;  %v1534_v16 = vmov 1966171168  }
 0x123   :  { %v296_v58 = vsub.f32 %v288_v49, %v292_v50  ;;  %v253_v59 = vadd.f32 %v252_v51, %v251_v43  ;;  %v281_v61 = vrot.slane %v280_v52, 1  ;;  %v319_v17 = vunpack.c.l.s4 %v1534_v16  ;;  %v1426_v16 = vld [vmem:[#allocation7 + $0x1d0] ss:$12 sps:$4 sm:$0xff]  }
 0x124   :  { %v299_v62 = vmax.f32 %v295_v53, 0.0  ;;  %v289_v63 = vmul.f32 0.125, %v275_v54  ;;  %v293_v0 = vmul.f32 %v285_v55, %v285_v55  ;;  %v321_v18 = vlaneseq }
 0x125   :  { %v300_v1 = vmax.f32 %v296_v58, 0.0  ;;  %v282_v2 = vadd.f32 %v281_v61, %v280_v52  ;;  %v286_v4 = vmul.f32 0.125, %v253_v59  ;;  %v320_v22 = vunpack.c.0.s8 %v319_v17  ;;  %v1427_v17 = vld [vmem:[#allocation7 + $0x1e4] ss:$12 sps:$4 sm:$0xff]  }
 0x126   :  { %v304_v5 = vadd.f32 1e-05, %v299_v62  ;;  %v297_v6 = vsub.f32 %v289_v63, %v293_v0  ;;  %v1655_v23 = vshrl.u32 %v321_v18, 7  ;;  %v1429_v18 = vld [vmem:[#allocation7 + $0x1e0] ss:$12 sps:$4 sm:$0xff]  }
 0x127   :  { %v305_v7 = vadd.f32 1e-05, %v300_v1  ;;  %v290_v9 = vmul.f32 0.125, %v282_v2  ;;  %v294_v10 = vmul.f32 %v286_v4, %v286_v4  ;;  %v1413_v2 = vld [vmem:[#allocation7 + $0x180] ss:$12 sps:$4 sm:$0xff]  }
 0x128   :  { %1447 = vrsqrt.f32 %v304_v5  ;;  %v301_v11 = vmax.f32 %v297_v6, 0.0  ;;  %v323_v25 = vsub.s32 %v320_v22, %v1655_v23  ;;  %v1662_v32 = vsub.s32 0, %v1655_v23  ;;  %v1414_v5 = vld [vmem:[#allocation7 + $0x188] ss:$12 sps:$4 sm:$0xff]   ;;  %v1434_v22 = vld [vmem:[#allocation7 + $0x200] ss:$12 sps:$4 sm:$0xff]  }
 0x129   :  { %1449 = vrsqrt.f32 %v305_v7  ;;  %v298_v12 = vsub.f32 %v290_v9, %v294_v10  ;;  %v1665_v34 = vsub.s32 1, %v1655_v23  ;;  %v1668_v35 = vsub.s32 2, %v1655_v23  ;;  %v1415_v6 = vld [vmem:[#allocation7 + $0x19c] ss:$12 sps:$4 sm:$0xff]   ;;  %v1417_v9 = vld [vmem:[#allocation7 + $0x198] ss:$12 sps:$4 sm:$0xff]  }
 0x12a   :  { %v306_v13 = vadd.f32 1e-05, %v301_v11  ;;  %v358_v36 = vsub.s32 3, %v1655_v23  ;;  %v1418_v10 = vld [vmem:[#allocation7 + $0x1a0] ss:$12 sps:$4 sm:$0xff]  }
 0x12b   :  { %v302_v14 = vmax.f32 %v298_v12, 0.0  ;;  %v1419_v11 = vld [vmem:[#allocation7 + $0x1b4] ss:$12 sps:$4 sm:$0xff]   ;;  %v1421_v12 = vld [vmem:[#allocation7 + $0x1b0] ss:$12 sps:$4 sm:$0xff]  }
 0x12c   :  { %1451 = vrsqrt.f32 %v306_v13  ;;  %v1422_v13 = vld [vmem:[#allocation7 + $0x1b8] ss:$12 sps:$4 sm:$0xff]  }
 0x12d   :  { %v307_v15 = vadd.f32 1e-05, %v302_v14  ;;  %v1423_v14 = vld [vmem:[#allocation7 + $0x1cc] ss:$12 sps:$4 sm:$0xff]  }
 0x12f   :  { %1453 = vrsqrt.f32 %v307_v15  ;;  %v1425_v15 = vld [vmem:[#allocation7 + $0x1c8] ss:$12 sps:$4 sm:$0xff]  }
 0x132   :  { %v1448_v19 = vpop.eup %1447 }
 0x133   :  { %v1450_v20 = vpop.eup %1449 }
 0x134   :  { %v316_v21 = vcombine.low %v1448_v19, %v1450_v20  ;;  %v1430_v19 = vld [vmem:[#allocation7 + $0x1e8] ss:$12 sps:$4 sm:$0xff]  }
 0x135   :  { %v1431_v20 = vld [vmem:[#allocation7 + $0x1fc] ss:$12 sps:$4 sm:$0xff]  }
 0x136   :  { %v1452_v24 = vpop.eup %1451  ;;  %v324_v28 = vrot.slane %v316_v21, %v323_v25  ;;  %v1433_v21 = vld [vmem:[#allocation7 + $0x1f8] ss:$12 sps:$4 sm:$0xff]  }
 0x139   :  { %v1454_v26 = vpop.eup %1453 }
 0x13a   :  { %v317_v27 = vcombine.low %v1452_v24, %v1454_v26  ;;  %v1435_v24 = vld [vmem:[#allocation7 + $0x214] ss:$12 sps:$4 sm:$0xff]   ;;  %v1438_v26 = vld [vmem:[#allocation7 + $0x218] ss:$12 sps:$4 sm:$0xff]  }
 0x13c   :  { %v331_v29 = vrot.slane %v317_v27, %v323_v25  ;;  %v1439_v27 = vld [vmem:[#allocation7 + $0x22c] ss:$12 sps:$4 sm:$0xff]  }
 0x13e   :  { %v332_v30 = vcombine.low %v324_v28, %v331_v29  ;;  %v1441_v28 = vld [vmem:[#allocation7 + $0x228] ss:$12 sps:$4 sm:$0xff]   ;;  %v1442_v29 = vld [vmem:[#allocation7 + $0x230] ss:$12 sps:$4 sm:$0xff]  }
 0x140   :  { %v339_v33 = vrot.slane %v332_v30, %v323_v25  ;;  %v1443_v30 = vld [vmem:[#allocation7 + $0x244] ss:$12 sps:$4 sm:$0xff]  }
 0x142   :  { %v341_v37 = vmul.f32 %v339_v33, %v303_v31  ;;  %v1445_v31 = vld [vmem:[#allocation7 + $0x240] ss:$12 sps:$4 sm:$0xff]   ;;  %v1446_v33 = vld [vmem:[#allocation7 + $0x248] ss:$12 sps:$4 sm:$0xff]  }
 0x144   :  { %v347_v39 = vrot.slane %v341_v37, %v1662_v32  ;;  %v351_v40 = vrot.slane %v341_v37, %v1665_v34  ;;  %v355_v41 = vrot.slane %v341_v37, %v1668_v35  ;;  %v359_v43 = vrot.slane %v341_v37, %v358_v36 }
 0x146   :  { %v364_v44 = vmul.f32 %v347_v39, %v1647_v38  ;;  %v365_v45 = vmul.f32 %v351_v40, %v1649_v42  ;;  %v366_v46 = vmul.f32 %v355_v41, %v285_v55  ;;  %v367_v47 = vmul.f32 %v359_v43, %v286_v4  ;;  %v342_v38 = vld [vmem:[%s1720_s3] sm:$0xf] }
 0x147   :  { %v401_v48 = vmul.f32 %v359_v43, %v1639_v8  ;;  %v399_v49 = vmul.f32 %v351_v40, %v1627_v60  ;;  %v398_v50 = vmul.f32 %v347_v39, %v1622_v57  ;;  %v400_v51 = vmul.f32 %v355_v41, %v1634_v3  ;;  %v986_v41 = vld [vmem:[%s1723_s6] sm:$0x7] }
 0x148   :  { %v372_v52 = vcombine.low %v364_v44, %v365_v45  ;;  %v373_v53 = vcombine.low %v366_v46, %v367_v47  ;;  %v681_v43 = vld [vmem:[%s1722_s5] sm:$0x7]  ;;  %v987_v44 = vunpack.c.l.bf16 %v986_v41 }
 0x149   :  { %v694_v45 = vrot.slane %v681_v43, %v1668_v35  ;;  %v686_v46 = vrot.slane %v681_v43, %v1662_v32 }
 0x14a   :  { %v380_v54 = vrot.slane %v372_v52, %v323_v25  ;;  %v387_v58 = vrot.slane %v373_v53, %v323_v25  ;;  %v992_v47 = vrot.slane %v987_v44, %v1662_v32 }
 0x14c   :  { %v388_v59 = vcombine.low %v380_v54, %v387_v58  ;;  %v1007_v58 = vrot.slane %v992_v47, %v1662_v32 }
 0x14e   :  { %v395_v42 = vrot.slane %v388_v59, %v323_v25  ;;  %v1437_v25 = vld [vmem:[#allocation7 + $0x210] ss:$12 sps:$4 sm:$0xff]  }
 0x150   :  { %v397_v55 = vsub.f32 %v342_v38, %v395_v42 }
 0x152   :  { %v418_v61 = vrot.slane %v397_v55, %v358_v36  ;;  %v410_v8 = vrot.slane %v397_v55, %v1665_v34  ;;  %v406_v60 = vrot.slane %v397_v55, %v1662_v32  ;;  %v414_v57 = vrot.slane %v397_v55, %v1668_v35 }
 0x154   :  { %v426_v62 = vadd.f32 %v418_v61, %v401_v48  ;;  %v424_v3 = vadd.f32 %v410_v8, %v399_v49  ;;  %v423_v63 = vadd.f32 %v406_v60, %v398_v50  ;;  %v1686_v0 = vadd.f32 %v414_v57, %v400_v51 }
 0x155   :  { %v690_v49 = vrot.slane %v681_v43, %v1665_v34  ;;  %v996_v50 = vrot.slane %v987_v44, %v1668_v35 }
 0x156   :  { %v428_v1 = vmax.f32 %v424_v3, 0.0  ;;  %v427_v4 = vmax.f32 %v423_v63, 0.0  ;;  %v430_v7 = vmax.f32 %v426_v62, 0.0  ;;  %v429_v36 = vmax.f32 %v1686_v0, 0.0 }
 0x157   :  { %v1011_v61 = vrot.slane %v996_v50, %v1662_v32 }
 0x158   :  { %765 = vmatprep.mubr.f32.mxu0 %v428_v1  ;;  %907 = vmatprep.mubr.f32.mxu1 %v428_v1  ;;  %v1045_v1 = vld [vmem:[#allocation2] ss:$0 sm:$0xff] }
 0x159   :  { %766 = vmatmul.mubr.f32.vlgmr.msra.gmra.mrb[0].mxu0 %v427_v4  ;;  %908 = vmatmul.mubr.f32.vlgmr.msra.gmra.mrb[4].mxu1 %v427_v4 }
 0x15a   :  { %1156 = vmatpush1.bf16.msra.mxu0 %v1413_v2  ;;  %1223 = vmatpush1.bf16.msra.mxu1 %v1414_v5 }
 0x15b   :  { %1043 = vmatprep.mubr.msk.f32.mxu0 %vm83_vm0, %v430_v7  ;;  %1044 = vmatprep.mubr.msk.f32.mxu1 %vm83_vm0, %v430_v7 }
 0x15c   :  { %1158 = vmatprep.subr.bf16.mxu0 %v1415_v6  ;;  %1224 = vmatprep.subr.bf16.mxu1 %v1533_v56 }
 0x15e   :  { %1160 = vmatpush1.bf16.msra.mxu0 %v1417_v9  ;;  %1226 = vmatpush1.bf16.msra.mxu1 %v1418_v10 }
 0x15f   :  { %1162 = vmatprep.subr.bf16.mxu0 %v1419_v11  ;;  %1227 = vmatprep.subr.bf16.mxu1 %v1533_v56 }
 0x162   :  { %1164 = vmatpush1.bf16.msra.mxu0 %v1421_v12  ;;  %1229 = vmatpush1.bf16.msra.mxu1 %v1422_v13 }
 0x163   :  { %1166 = vmatprep.subr.bf16.mxu0 %v1423_v14  ;;  %1230 = vmatprep.subr.bf16.mxu1 %v1533_v56 }
 0x166   :  { %1168 = vmatpush1.bf16.msra.mxu0 %v1425_v15  ;;  %1232 = vmatpush1.bf16.msra.mxu1 %v1426_v16 }
 0x167   :  { %1170 = vmatprep.subr.bf16.mxu0 %v1427_v17  ;;  %1233 = vmatprep.subr.bf16.mxu1 %v1533_v56 }
 0x16a   :  { %1172 = vmatpush1.bf16.msra.mxu0 %v1429_v18  ;;  %1235 = vmatpush1.bf16.msra.mxu1 %v1430_v19 }
 0x16b   :  { %1174 = vmatprep.subr.bf16.mxu0 %v1431_v20  ;;  %1236 = vmatprep.subr.bf16.mxu1 %v1533_v56 }
 0x16e   :  { %1176 = vmatpush1.bf16.msra.mxu0 %v1433_v21  ;;  %1238 = vmatpush1.bf16.msra.mxu1 %v1434_v22 }
 0x16f   :  { %1178 = vmatprep.subr.bf16.mxu0 %v1435_v24  ;;  %1239 = vmatprep.subr.bf16.mxu1 %v1533_v56 }
 0x172   :  { %1180 = vmatpush1.bf16.msra.mxu0 %v1437_v25  ;;  %1241 = vmatpush1.bf16.msra.mxu1 %v1438_v26 }
 0x173   :  { %1182 = vmatprep.subr.bf16.mxu0 %v1439_v27  ;;  %1242 = vmatprep.subr.bf16.mxu1 %v1533_v56 }
 0x176   :  { %1184 = vmatpush1.bf16.msra.mxu0 %v1441_v28  ;;  %1244 = vmatpush1.bf16.msra.mxu1 %v1442_v29 }
 0x177   :  { %1186 = vmatprep.subr.bf16.mxu0 %v1443_v30  ;;  %1245 = vmatprep.subr.bf16.mxu1 %v1533_v56  ;;  %v999_v56 = vsub.s32 4, %v1655_v23 }
 0x179   :  { %v1000_v48 = vrot.slane %v987_v44, %v999_v56 }
 0x17a   :  { %1188 = vmatpush1.bf16.msra.mxu0 %v1445_v31  ;;  %1247 = vmatpush1.bf16.msra.mxu1 %v1446_v33 }
 0x17b   :  { %v1015_v42 = vrot.slane %v1000_v48, %v1662_v32 }
 0x17d   :  { %837 = vmatmul.mubr.f32.vlgmr.msra.gmra.mrb[0].mxu0 %v429_v36  ;;  %978 = vmatmul.mubr.f32.vlgmr.msra.gmra.mrb[6].mxu1 %v429_v36 }
 0x22c   :  { %v1078_v37 = vpop.f32.mrb[4].mxu1 }
 0x22d   :  { %v1079_v39 = vpop.f32.mrb[5].mxu1 }
 0x22e   :  { %v1080_v40 = vadd.f32 %v1079_v39, %v1078_v37 }
 0x230   :  { %v910_v51 = vadd.f32 %v1080_v40, %v694_v45 }
 0x250   :  { %v838_v52 = vpop.f32.mrb[0].mxu0  ;;  %v979_v53 = vpop.f32.mrb[6].mxu1 }
 0x251   :  { %v1248_v54 = vadd.f32 %v838_v52, %v686_v46  ;;  %v980_v59 = vadd.f32 %v979_v53, %v910_v51  ;;  %v840_v38 = vpop.f32.mrb[1].mxu0  ;;  %v981_v23 = vpop.f32.mrb[7].mxu1 }
 0x252   :  { %v1249_v55 = vadd.f32 %v840_v38, %v690_v49 }
 0x253   :  { %v983_v8 = vmax.f32 %v1248_v54, 0.0  ;;  %v985_v60 = vmax.f32 %v980_v59, 0.0 }
 0x254   :  { %v984_v57 = vmax.f32 %v1249_v55, 0.0 }
 0x255   :  { %v1016_v34 = vmul.f32 %v1007_v58, %v983_v8  ;;  %v1018_v62 = vmul.f32 %v1015_v42, %v985_v60 }
 0x256   :  { %v1017_v35 = vmul.f32 %v1011_v61, %v984_v57 }
 0x257   :  { %v1021_v63 = vsel %vm1020_vm1, %v1018_v62, 0.0 }
 0x258   :  { %v1019_v3 = vadd.f32 %v1017_v35, %v1016_v34 }
 0x25a   :  { %v1022_v0 = vadd.f32 %v1021_v63, %v1019_v3 }
 0x25c   :  { %1023 = vadd.xlane.f32.xlu0 %v1022_v0 }
 0x2e9   :  { %v1024_v2 = vpop.xlane.xlu0 %1023 }
 0x2ea   :  { %v1032_v4 = vadd.f32 %v1045_v1, %v1024_v2 }
 0x2ec   :  { %1034 = vst.msk [vmem:[%s1725_s8] sm:$0xff] %vm1033_vm2, %v1032_v4 }
 0x2ed   :  { %1039 = vsyncpa [#allocation4], 1 }
 0x2ee   :  { %1040 = vsyncpa [#allocation6], 1 }

</bundles_post_ra>
